<compile_context>
chip_gen: v5e
topology: v5e:2x2
jax: 0.10.0
libtpu: 0.0.40
codegen_flags: <defaults>
</compile_context>

<pallas_src>
import math

import jax
import jax.numpy as jnp
from jax.experimental import pallas as pl
from jax.experimental.pallas import tpu as pltpu


# ----------------------------- helpers --------------------------------------

def _round_up(x, m):
    return ((x + m - 1) // m) * m


def _cdiv(a, b):
    return -(-a // b)


def _vmem_capacity_bytes():
    """Per-core VMEM capacity; conservative 64 MiB (v7x) fallback."""
    try:
        info = pltpu.get_tpu_info()
        cap = int(getattr(info, "vmem_capacity_bytes", 64 << 20))
        if cap > 0:
            return cap
    except Exception:
        pass
    return 64 << 20


def _plan_tiles(C, O, budget, *, x_itemsize=4, w_itemsize=2, out_itemsize=4):
    """Choose (tile_o, tile_m_target) for a single-pass (K untiled) matmul.

    tile_o == O means the whole (C, O) weight is VMEM-resident (path A).
    Otherwise O is tiled in 128-aligned chunks (path B), K stays untiled.
    """
    def need(tm, to):
        # double-buffered x / w / bias / out tiles
        return 2 * (tm * C * x_itemsize + C * to * w_itemsize
                    + to * 4 + tm * to * out_itemsize)

    # Path A: weight fully resident -> single HBM pass for x, w and out.
    if need(128, O) <= budget:
        for tm in (512, 256, 128):
            if need(tm, O) <= budget:
                return O, tm
    # Path B: keep K untiled, tile O lane-aligned.
    for to in (512, 256, 128):
        for tm in (512, 256, 128, 64, 32, 16, 8):
            if need(tm, to) <= budget:
                return to, tm
    # TODO(synk): K-tiled accumulator fallback for extremely large C.
    raise NotImplementedError("reduction-dim tiling not implemented for this size")


def _prepare_linear(w_t, b, compute_dtype, budget):
    """One-time weight prep: cast to compute_dtype, pad O if it must be tiled."""
    C, O = w_t.shape
    tile_o, tm_target = _plan_tiles(
        C, O, budget,
        x_itemsize=4, w_itemsize=jnp.dtype(compute_dtype).itemsize, out_itemsize=4)
    Op = O if tile_o == O else _round_up(O, tile_o)
    w_p = w_t.astype(compute_dtype)
    b_p = b.astype(jnp.float32).reshape(1, O)
    if Op != O:
        w_p = jnp.pad(w_p, ((0, 0), (0, Op - O)))
        b_p = jnp.pad(b_p, ((0, 0), (0, Op - O)))
    return dict(w=w_p, b=b_p, C=C, O=O, Op=Op,
                tile_o=tile_o, tile_m_target=tm_target)


# ----------------------------- Pallas kernel --------------------------------

def _proj_kernel(x_ref, w_ref, b_ref, o_ref):
    # x_ref: (tile_m, C) native dtype, cast here (VPU, hidden under MXU).
    # w_ref: (C, tile_o) bf16 (pre-cast once at init).
    # b_ref: (1, tile_o) f32.  o_ref: (tile_m, tile_o).
    x = x_ref[...].astype(w_ref.dtype)
    acc = jnp.dot(x, w_ref[...], preferred_element_type=jnp.float32)
    o_ref[...] = (acc + b_ref[...]).astype(o_ref.dtype)


def linear_pallas(x2d, prep, *, out_dtype=None):
    """y = x2d @ W + b, single HBM pass, f32 accumulation.

    x2d: (M, C) in its native dtype.  prep: dict from _prepare_linear.
    """
    M, C = x2d.shape
    assert C == prep["C"], (C, prep["C"])
    out_dtype = x2d.dtype if out_dtype is None else out_dtype

    O, Op, tile_o = prep["O"], prep["Op"], prep["tile_o"]
    tm_target = prep["tile_m_target"]

    # --- M tiling: pick block count first, then the smallest aligned tile ---
    n_m = max(1, _cdiv(M, tm_target))
    if n_m == 1 and M >= 256 and Op // tile_o == 1:
        n_m = 2          # give both v7x TensorCores a "parallel" block
    tile_m = _round_up(_cdiv(M, n_m), 8)
    Mp = n_m * tile_m

    x_p = x2d
    if Mp != M:
        x_p = jnp.pad(x2d, ((0, Mp - M), (0, 0)))

    m_tiles = Mp // tile_m
    o_tiles = Op // tile_o

    x_itemsize = jnp.dtype(x2d.dtype).itemsize
    w_itemsize = jnp.dtype(prep["w"].dtype).itemsize
    o_itemsize = jnp.dtype(out_dtype).itemsize

    # Grid ordering: keep the array that would otherwise be re-read the most
    # on the outer axis (its block index then changes only per outer step).
    w_bytes = C * Op * w_itemsize
    x_bytes = Mp * C * x_itemsize
    m_outer = (m_tiles * w_bytes) <= (o_tiles * x_bytes)
    if m_outer:
        grid = (m_tiles, o_tiles)
        x_map = lambda i, j: (i, 0)
        w_map = lambda i, j: (0, j)
        b_map = lambda i, j: (0, j)
        o_map = lambda i, j: (i, j)
    else:
        grid = (o_tiles, m_tiles)
        x_map = lambda j, i: (i, 0)
        w_map = lambda j, i: (0, j)
        b_map = lambda j, i: (0, j)
        o_map = lambda j, i: (i, j)

    need = 2 * (tile_m * C * x_itemsize + C * tile_o * w_itemsize
                + tile_o * 4 + tile_m * tile_o * o_itemsize)
    cap = _vmem_capacity_bytes()
    vmem_limit = int(min(cap - (8 << 20), max(need + (4 << 20), 32 << 20)))

    cost = pl.CostEstimate(
        flops=2 * Mp * C * Op,
        transcendentals=0,
        bytes_accessed=int(x_bytes + w_bytes + Mp * Op * o_itemsize))

    out = pl.pallas_call(
        _proj_kernel,
        out_shape=jax.ShapeDtypeStruct((Mp, Op), out_dtype),
        grid_spec=pltpu.PrefetchScalarGridSpec(
            num_scalar_prefetch=0,
            grid=grid,
            in_specs=[
                pl.BlockSpec((tile_m, C), x_map),
                pl.BlockSpec((C, tile_o), w_map),
                pl.BlockSpec((1, tile_o), b_map),
            ],
            out_specs=pl.BlockSpec((tile_m, tile_o), o_map),
        ),
        compiler_params=pltpu.CompilerParams(
            dimension_semantics=("parallel", "parallel"),
            vmem_limit_bytes=vmem_limit),
        cost_estimate=cost,
    )(x_p, prep["w"], prep["b"])

    if (Mp, Op) != (M, O):
        out = out[:M, :O]
    return out


# ------------------------------- Module glue ---------------------------------

class LinearProjectionPallas:
    """Mirrors ultralytics LinearProjection.forward with Pallas matmuls."""

    def __init__(self, dim, heads=8, dim_head=64, bias=True, key=None,
                 compute_dtype=jnp.bfloat16):
        inner_dim = dim_head * heads
        # The reference forward reshapes with C // heads, which only works when
        # inner_dim == dim (i.e. dim_head == dim // heads).  Assert early.
        assert inner_dim == dim, (
            "LinearProjection.forward requires dim_head == dim // heads "
            f"(got inner_dim={inner_dim}, dim={dim})")
        self.dim = dim
        self.heads = heads
        self.inner_dim = inner_dim
        self.compute_dtype = compute_dtype

        key = jax.random.PRNGKey(0) if key is None else key
        k1, k2, k3, k4 = jax.random.split(key, 4)

        # nn.Linear-style init; f32 copies kept for the reference check.
        bound = 1.0 / math.sqrt(dim)
        self.wq = jax.random.uniform(k1, (inner_dim, dim), jnp.float32,
                                     -bound, bound)
        self.bq = (jax.random.uniform(k2, (inner_dim,), jnp.float32,
                                      -bound, bound)
                   if bias else jnp.zeros((inner_dim,), jnp.float32))
        self.wkv = jax.random.uniform(k3, (2 * inner_dim, dim), jnp.float32,
                                      -bound, bound)
        self.bkv = (jax.random.uniform(k4, (2 * inner_dim,), jnp.float32,
                                       -bound, bound)
                    if bias else jnp.zeros((2 * inner_dim,), jnp.float32))

        # One-time weight prep (transpose + bf16 cast + optional O-pad + plan).
        cap = _vmem_capacity_bytes()
        budget = min(int(cap * 0.7), 100 << 20)
        self._q_prep = _prepare_linear(self.wq.T, self.bq, compute_dtype, budget)
        self._kv_prep = _prepare_linear(self.wkv.T, self.bkv, compute_dtype, budget)
        wqkv_t = jnp.concatenate([self.wq.T, self.wkv.T], axis=1)
        bqkv = jnp.concatenate([self.bq, self.bkv], axis=0)
        self._qkv_prep = _prepare_linear(wqkv_t, bqkv, compute_dtype, budget)

    def __call__(self, x, attn_kv=None):
        B_, N, C = x.shape
        heads = self.heads
        dh = C // heads
        inner = self.inner_dim

        if attn_kv is None:
            # Fused q/kv projection: one kernel launch, x streamed once,
            # lane-dense (3*inner) output slab.
            qkv = linear_pallas(x.reshape(B_ * N, C), self._qkv_prep)
            q_flat = qkv[:, :inner]
            kv_flat = qkv[:, inner:]
            # TODO(synk): keep the lane-dense (M, 3*inner) slab and fuse the
            # sub-128-lane head split into the downstream attention kernel.
            q = q_flat.reshape(B_, N, heads, dh).transpose(0, 2, 1, 3)
            kv = kv_flat.reshape(B_, N, 2, heads, dh).transpose(2, 0, 3, 1, 4)
            k, v = kv[0], kv[1]
        else:
            # Cross-attention: kv computed ONCE on the un-broadcast (N_kv, C)
            # input; broadcast across batch after the matmul (B_x saving).
            N_kv = attn_kv.shape[0]
            q_flat = linear_pallas(x.reshape(B_ * N, C), self._q_prep)
            kv_flat = linear_pallas(attn_kv, self._kv_prep)
            q = q_flat.reshape(B_, N, heads, dh).transpose(0, 2, 1, 3)
            kv1 = kv_flat.reshape(N_kv, 2, heads, dh).transpose(1, 2, 0, 3)
            kv = jnp.broadcast_to(kv1[:, None], (2, B_, heads, N_kv, dh))
            k, v = kv[0], kv[1]
        return q, k, v


# --------------------------------- Test ---------------------------------------

def _reference(mod, x, attn_kv=None):
    """Pure-jnp f32 reference implementing the PyTorch forward exactly."""
    B_, N, C = x.shape
    heads = mod.heads
    dh = C // heads
    if attn_kv is not None:
        attn_kv = jnp.broadcast_to(attn_kv[None, :, :],
                                   (B_, attn_kv.shape[0], C))
    else:
        attn_kv = x
    N_kv = attn_kv.shape[1]
    q = x @ mod.wq.T + mod.bq
    kv = attn_kv @ mod.wkv.T + mod.bkv
    q = q.reshape(B_, N, 1, heads, dh).transpose(2, 0, 3, 1, 4)[0]
    kv = kv.reshape(B_, N_kv, 2, heads, dh).transpose(2, 0, 3, 1, 4)
    return q, kv[0], kv[1]


if __name__ == "__main__":
    # Shapes consistent with the module: inner_dim == C, i.e. dim_head = dim // heads.
    B, N, C = 2, 8, 32
    heads, dim_head = 4, 8           # inner_dim = 32 == C
    N_kv = 8

    key = jax.random.PRNGKey(0)
    kx, kkv, kparam = jax.random.split(key, 3)
    x = jax.random.normal(kx, (B, N, C), jnp.float32)
    attn_kv = jax.random.normal(kkv, (N_kv, C), jnp.float32)

    mod = LinearProjectionPallas(dim=C, heads=heads, dim_head=dim_head,
                                 bias=True, key=kparam)

    # Self-attention path (fused q/kv projection).
    q, k, v = mod(x)
    jax.block_until_ready((q, k, v))
    q_ref, k_ref, v_ref = _reference(mod, x)
    assert q.shape == (B, heads, N, C // heads)
    assert k.shape == (B, heads, N, C // heads)
    assert v.shape == (B, heads, N, C // heads)
    # bf16 inputs/weights with f32 accumulation vs f32 reference.
    assert jnp.allclose(q, q_ref, atol=2e-2, rtol=2e-2)
    assert jnp.allclose(k, k_ref, atol=2e-2, rtol=2e-2)
    assert jnp.allclose(v, v_ref, atol=2e-2, rtol=2e-2)

    # Cross-attention path (kv computed once, broadcast over batch).
    q2, k2, v2 = mod(x, attn_kv)
    jax.block_until_ready((q2, k2, v2))
    q2_ref, k2_ref, v2_ref = _reference(mod, x, attn_kv)
    assert k2.shape == (B, heads, N_kv, C // heads)
    assert jnp.allclose(q2, q2_ref, atol=2e-2, rtol=2e-2)
    assert jnp.allclose(k2, k2_ref, atol=2e-2, rtol=2e-2)
    assert jnp.allclose(v2, v2_ref, atol=2e-2, rtol=2e-2)

    print("KERNEL_OK")
</pallas_src>

<mosaic_0001>
module attributes {stable_mosaic.version = 11 : i64} {
  func.func @_proj_kernel(%arg0: i32, %arg1: i32, %arg2: memref<16x32xf32, #tpu.memory_space<vmem>>, %arg3: memref<32x96xbf16, #tpu.memory_space<vmem>>, %arg4: memref<1x96xf32, #tpu.memory_space<vmem>>, %arg5: memref<16x96xf32, #tpu.memory_space<vmem>>) attributes {dimension_semantics = [#tpu.dimension_semantics<parallel>, #tpu.dimension_semantics<parallel>], iteration_bounds = array<i64: 1, 1>, scalar_prefetch = 0 : i64, scratch_operands = 0 : i64, tpu.core_type = #tpu.core_type<tc>, window_params = [{transform_indices = @transform_0, window_bounds = array<i64: 16, 32>}, {transform_indices = @transform_1, window_bounds = array<i64: 32, 96>}, {transform_indices = @transform_2, window_bounds = array<i64: 1, 96>}, {transform_indices = @transform_3, window_bounds = array<i64: 16, 96>}]} {
    %c0 = arith.constant 0 : index
    %c0_0 = arith.constant 0 : index
    %0 = vector.load %arg2[%c0, %c0_0] : memref<16x32xf32, #tpu.memory_space<vmem>>, vector<16x32xf32>
    %1 = arith.truncf %0 : vector<16x32xf32> to vector<16x32xbf16>
    %c0_1 = arith.constant 0 : index
    %c0_2 = arith.constant 0 : index
    %2 = vector.load %arg3[%c0_1, %c0_2] : memref<32x96xbf16, #tpu.memory_space<vmem>>, vector<32x96xbf16>
    %cst = arith.constant dense<0.000000e+00> : vector<16x96xf32>
    %3 = tpu.matmul %1, %2, %cst {dimension_numbers = #tpu.dot_dimension_numbers<[1], [0], [0], [1], [0, 0, 1, 1], [], []>} : vector<16x32xbf16>, vector<32x96xbf16>, vector<16x96xf32> -> vector<16x96xf32>
    %c0_3 = arith.constant 0 : index
    %c0_4 = arith.constant 0 : index
    %4 = vector.load %arg4[%c0_3, %c0_4] : memref<1x96xf32, #tpu.memory_space<vmem>>, vector<1x96xf32>
    %5 = vector.broadcast %4 : vector<1x96xf32> to vector<16x96xf32>
    %6 = arith.addf %3, %5 : vector<16x96xf32>
    %c0_5 = arith.constant 0 : index
    %c0_6 = arith.constant 0 : index
    %7 = vector.load %arg5[%c0_5, %c0_6] : memref<16x96xf32, #tpu.memory_space<vmem>>, vector<16x96xf32>
    tpu.vector_store %arg5[%c0_5, %c0_6], %6 {strides = array<i32>} : memref<16x96xf32, #tpu.memory_space<vmem>>, vector<16x96xf32>,
    return
  }
  func.func @transform_0(%arg0: i32, %arg1: i32) -> (i32, i32) {
    %c0_i32 = arith.constant 0 : i32
    %c0_i32_0 = arith.constant 0 : i32
    return %arg1, %c0_i32 : i32, i32
  }
  func.func @transform_1(%arg0: i32, %arg1: i32) -> (i32, i32) {
    %c0_i32 = arith.constant 0 : i32
    %c0_i32_0 = arith.constant 0 : i32
    return %c0_i32, %arg0 : i32, i32
  }
  func.func @transform_2(%arg0: i32, %arg1: i32) -> (i32, i32) {
    %c0_i32 = arith.constant 0 : i32
    %c0_i32_0 = arith.constant 0 : i32
    return %c0_i32, %arg0 : i32, i32
  }
  func.func @transform_3(%arg0: i32, %arg1: i32) -> (i32, i32) {
    %c0_i32 = arith.constant 0 : i32
    return %arg1, %arg0 : i32, i32
  }
}

</mosaic_0001>

<bundles_post_ra>
// kernel: tpu_custom_call.1
= control target key start
LH: loop header
LB: loop body
LE: loop exit
PB: predicated region body
PF: predicated region fallthrough
CT: control target
= control target key end

     0   :  { %8 = vsyncpa [#allocation3], 0  ;;  %s254_s0 = inlined_call_operand.hbm [shape: f32[16,32], index: 0, kind: input, shape index: {}]   ;;  %s255_s1 = inlined_call_operand.hbm [shape: bf16[32,96], index: 1, kind: input, shape index: {}]   ;;  %s256_s2 = inlined_call_operand.vmem [shape: f32[1,96], index: 2, kind: input, shape index: {}]   ;;  %s257_s3 = inlined_call_operand.hbm [shape: f32[16,96], index: 3, kind: output, shape index: {}]  }
   0x1   :  { %9 = vsyncpa [#allocation6], 0 }
   0x2   :  { %10 = vsyncpa [#allocation4], 0  ;;  %s15_s14 = sshll.u32 %s254_s0, 4  ;;  %s209_s15 = smov [#allocation2]   ;;  %s16_s14 = int_to_ptr.hbm [resolvable:$true] %s15_s14 }
   0x3   :  { %s17_s16 = sshll.u32 %s209_s15, 4  ;;  %s28_s19 = sshll.u32 %s255_s1, 4  ;;  %s18_s16 = int_to_ptr.vmem [resolvable:$true] %s17_s16  ;;  %s29_s19 = int_to_ptr.hbm [resolvable:$true] %s28_s19 }
   0x4   :  { %s210_s20 = smov 128   ;;  %s211_s21 = smov 8  }
   0x5   :  { %23 = dma.hbm_to_vmem [thread:$0]  %s16_s14, 256, %s18_s16, [#allocation3], %s210_s20, %s210_s20, %s211_s21  }
   0x6   :  { %s212_s22 = smov [#allocation5]   ;;  %s213_s24 = smov 64  }
   0x7   :  { %s30_s23 = sshll.u32 %s212_s22, 4  ;;  %s214_s0 = smov 4   ;;  %s31_s23 = int_to_ptr.vmem [resolvable:$true] %s30_s23 }
   0x8   :  { %36 = dma.hbm_to_vmem [thread:$0]  %s29_s19, 256, %s31_s23, [#allocation6], %s213_s24, %s213_s24, %s214_s0  }
   0x9   :  { %203 = dma.done.wait [#allocation3], 256  }
   0xa   :  { %204 = vsyncadd [#allocation3], 4294967040 }
   0xb   :  { %205 = dma.done.wait [#allocation6], 256  }
   0xc   :  { %206 = vsyncadd [#allocation6], 4294967040  ;;  %v122_v0 = vld [vmem:[#allocation5 + $0x8] sm:$0xff]  ;;  %v121_v1 = vld [vmem:[#allocation5] sm:$0xff]  ;;  %vm71_vm0 = vcmask 261120   ;;  %vm89_vm1 = vcmask 785408  }
   0xd   :  { %81 = vmatpush.bf16.msra.mxu0 %v122_v0  ;;  %v48_v2 = vld [vmem:[#allocation2] sm:$0xff]  ;;  %v49_v3 = vld [vmem:[#allocation2 + $0x8] sm:$0xff]  ;;  %s215_s26 = smov [#allocation7]   ;;  %s98_s30 = sshll.u32 %s257_s3, 4  ;;  %s99_s30 = int_to_ptr.hbm [resolvable:$true] %s98_s30 }
   0xe   :  { %v50_v4 = vpack.c.bf16 %v49_v3, %v48_v2  ;;  %v130_v5 = vld [vmem:[%s256_s2] ss:$0 sm:$0xff]  ;;  %s96_s27 = sshll.u32 %s215_s26, 4  ;;  %s97_s27 = int_to_ptr.vmem [resolvable:$true] %s96_s27 }
  0x11   :  { %82 = vmatpush.bf16.msra.mxu0 %v121_v1 }
  0x14   :  { %120 = vmatmul.msk.bf16.vlgmr.msra.gmra.mxu0 %vm71_vm0, %v50_v4 }
  0x91   :  { %v84_v6 = vpop.f32.mrf.mxu0 }
  0x92   :  { %v85_v7 = vadd.f32 %v130_v5, %v84_v6 }
  0x94   :  { %90 = vst.msk [vmem:[#allocation7] sm:$0xff] %vm89_vm1, %v85_v7 }
  0x99   :  { %v86_v8 = vpop.f32.mrf.mxu0 }
  0x9a   :  { %v87_v9 = vadd.f32 %v130_v5, %v86_v8 }
  0x9c   :  { %91 = vst.msk [vmem:[#allocation7 + $0x8] sm:$0xff] %vm89_vm1, %v87_v9 }
  0x9d   :  { %104 = dma.vmem_to_hbm [thread:$0]  %s97_s27, 256, %s99_s30, [#allocation4], %s210_s20, %s210_s20, %s211_s21  }
  0x9e   :  { %207 = dma.done.wait [#allocation4], 256  }
  0x9f   :  { %208 = vsyncadd [#allocation4], 4294967040 }
  0xa0   :  { %109 = vsyncpa [#allocation3], 1 }
  0xa1   :  { %110 = vsyncpa [#allocation6], 1 }
  0xa2   :  { %111 = vsyncpa [#allocation4], 1 }

</bundles_post_ra>
